<compile_context>
chip_gen: v7x
topology: tpu7x:2x2x1
jax: 0.10.0
libtpu: 0.0.40
codegen_flags: <defaults>
</compile_context>

<pallas_src>
import functools

import jax
import jax.numpy as jnp
import numpy as np
from jax import lax
from jax.experimental import pallas as pl
from jax.experimental.pallas import tpu as pltpu

_LANES = 128
_VMEM_BLOCK_BUDGET = 4 << 20     # ~4 MiB per input/output block (per buffer)
_VMEM_LIMIT_BYTES = 32 << 20     # explicit scoped-VMEM limit (v5e default is 16 MiB)


def _cparams(dim_sem):
    return pltpu.CompilerParams(
        dimension_semantics=dim_sem,
        vmem_limit_bytes=_VMEM_LIMIT_BYTES,
    )


# --------------------------- elementwise kernels ---------------------------
def _ew_kernel(fn, x_ref, o_ref):
    o_ref[...] = fn(x_ref[...]).astype(o_ref.dtype)


def _elementwise_pallas(fn, x):
    if x.size == 0:
        return x
    orig_shape = x.shape
    flat = x.reshape(-1)
    n = flat.shape[0]
    rows = pl.cdiv(n, _LANES)
    padded = rows * _LANES
    if padded != n:
        # The (rows, 128) reshape strictly requires a 128 multiple; this pads
        # at most 127 elements.  The ragged grid tail needs no padding.
        flat = jnp.pad(flat, (0, padded - n))
    x2 = flat.reshape(rows, _LANES)

    itemsize = np.dtype(x.dtype).itemsize
    max_rows = max(32, (_VMEM_BLOCK_BUDGET // (_LANES * itemsize)) // 32 * 32)
    if rows <= max_rows:
        tile_rows, nblk = rows, 1            # single block == full array dims
    else:
        tile_rows, nblk = max_rows, pl.cdiv(rows, max_rows)

    out = pl.pallas_call(
        functools.partial(_ew_kernel, fn),
        out_shape=jax.ShapeDtypeStruct((rows, _LANES), x.dtype),
        grid=(nblk,),
        in_specs=[pl.BlockSpec((tile_rows, _LANES), lambda i: (i, 0))],
        out_specs=pl.BlockSpec((tile_rows, _LANES), lambda i: (i, 0)),
        compiler_params=_cparams(("parallel",)),
    )(x2)
    out = out.reshape(-1)
    if padded != n:
        out = out[:n]
    return out.reshape(orig_shape)


# ------------- reduction over a non-minor axis: (pre, K, post) -------------
# Reduction axis K sits on sublanes; the (large) post axis is lane-dense and
# tiled over the grid.  Used for softmax2d / dim=1 NCHW / any dim with a
# non-trivial trailing extent — no wrapper transposes needed.
def _softmax_axis1_kernel(log, x_ref, o_ref):
    x = x_ref[...].astype(jnp.float32)            # (1, K, T)
    m = jnp.max(x, axis=1, keepdims=True)
    z = x - m
    e = jnp.exp(z)
    s = jnp.sum(e, axis=1, keepdims=True)
    if log:
        o_ref[...] = (z - jnp.log(s)).astype(o_ref.dtype)
    else:
        inv = pl.reciprocal(s, approx=True)       # EUP slot, free when HBM-bound
        o_ref[...] = (e * inv).astype(o_ref.dtype)


def _argmax_axis1_kernel(x_ref, o_ref):
    x = x_ref[...]                                # (1, K, T), native dtype
    k = x.shape[1]
    m = jnp.max(x, axis=1, keepdims=True)
    idx = lax.broadcasted_iota(jnp.int32, x.shape, 1)
    masked = jnp.where(x == m, idx, jnp.int32(k))
    # min(...) == k only for all-NaN pixels; clamp to stay in range.
    o_ref[...] = jnp.minimum(jnp.min(masked, axis=1, keepdims=True), k - 1)


def _axis1_pallas(kernel, x3, out_dtype, out_k):
    pre, K, post = x3.shape
    itemsize = max(np.dtype(x3.dtype).itemsize, np.dtype(out_dtype).itemsize)
    rows = max(K, out_k)
    max_lanes = max(_LANES,
                    (_VMEM_BLOCK_BUDGET // max(1, rows * itemsize))
                    // _LANES * _LANES)
    if post <= max_lanes:
        tile, nblk = post, 1        # full-extent lane dim, no 128 constraint
    else:
        tile, nblk = max_lanes, pl.cdiv(post, max_lanes)

    # Single flattened "parallel" grid axis (pre folded into the lane-block
    # axis) so megacore sharding has work even when batch == 1 (v7x).
    out = pl.pallas_call(
        kernel,
        out_shape=jax.ShapeDtypeStruct((pre, out_k, post), out_dtype),
        grid=(pre * nblk,),
        in_specs=[pl.BlockSpec((1, K, tile),
                               lambda g: (g // nblk, 0, g % nblk))],
        out_specs=pl.BlockSpec((1, out_k, tile),
                               lambda g: (g // nblk, 0, g % nblk)),
        compiler_params=_cparams(("parallel",)),
    )(x3)
    return out


# ------------------- reduction over the last axis: (M, K) ------------------
def _softmax_last_kernel(log, x_ref, o_ref):
    x = x_ref[...].astype(jnp.float32)            # (tm, K)
    m = jnp.max(x, axis=-1, keepdims=True)
    z = x - m
    e = jnp.exp(z)
    s = jnp.sum(e, axis=-1, keepdims=True)
    if log:
        o_ref[...] = (z - jnp.log(s)).astype(o_ref.dtype)
    else:
        inv = pl.reciprocal(s, approx=True)
        o_ref[...] = (e * inv).astype(o_ref.dtype)


def _argmax_last_kernel(x_ref, o_ref):
    x = x_ref[...]                                # (tm, K), native dtype
    k = x.shape[-1]
    m = jnp.max(x, axis=-1, keepdims=True)
    idx = lax.broadcasted_iota(jnp.int32, x.shape, x.ndim - 1)
    masked = jnp.where(x == m, idx, jnp.int32(k))
    o_ref[...] = jnp.minimum(jnp.min(masked, axis=-1, keepdims=True), k - 1)


def _last_axis_pallas(kernel, x2, out_dtype, out_k):
    M, K = x2.shape
    itemsize = max(np.dtype(x2.dtype).itemsize, np.dtype(out_dtype).itemsize)
    max_rows = max(8, (_VMEM_BLOCK_BUDGET // max(1, K * itemsize)) // 32 * 32)
    if M <= max_rows:
        tile_m, nblk = M, 1
    else:
        tile_m, nblk = max_rows, pl.cdiv(M, max_rows)
    out = pl.pallas_call(
        kernel,
        out_shape=jax.ShapeDtypeStruct((M, out_k), out_dtype),
        grid=(nblk,),
        in_specs=[pl.BlockSpec((tile_m, K), lambda i: (i, 0))],
        out_specs=pl.BlockSpec((tile_m, out_k), lambda i: (i, 0)),
        compiler_params=_cparams(("parallel",)),
    )(x2)
    return out


# ------------------------------ dispatchers --------------------------------
def _softmax_pallas(x, dim, log=False):
    nd = x.ndim
    if dim is None:
        # TODO(synk): legacy nn.Softmax(dim=None) implicit-dim behavior not
        # reproduced; defaulting to the last axis.
        dim = nd - 1
    dim = dim % nd
    K = x.shape[dim]
    pre = int(np.prod(x.shape[:dim], dtype=np.int64)) if dim > 0 else 1
    post = int(np.prod(x.shape[dim + 1:], dtype=np.int64)) if dim < nd - 1 else 1
    if post > 1:
        out = _axis1_pallas(functools.partial(_softmax_axis1_kernel, log),
                            x.reshape(pre, K, post), x.dtype, K)
    else:
        out = _last_axis_pallas(functools.partial(_softmax_last_kernel, log),
                                x.reshape(pre, K), x.dtype, K)
    return out.reshape(x.shape)


def _argmax_flat_stage1_kernel(n, tile_rows, compute_dtype,
                               x_ref, vmax_ref, vidx_ref):
    i = pl.program_id(0)
    x = x_ref[...].astype(compute_dtype)          # (tile_rows, 128)
    rr = lax.broadcasted_iota(jnp.int32, x.shape, 0)
    cc = lax.broadcasted_iota(jnp.int32, x.shape, 1)
    flat_idx = (i * tile_rows + rr) * _LANES + cc
    if jnp.issubdtype(compute_dtype, jnp.floating):
        fill = jnp.asarray(-jnp.inf, compute_dtype)
    else:
        fill = jnp.asarray(np.iinfo(np.dtype(compute_dtype)).min, compute_dtype)
    x = jnp.where(flat_idx < n, x, fill)          # in-kernel tail mask, no HBM pad
    m = jnp.max(x, keepdims=True)                 # (1, 1)
    sentinel = jnp.int32(np.iinfo(np.int32).max)
    idx = jnp.min(jnp.where(x == m, flat_idx, sentinel), keepdims=True)
    vmax_ref[...] = jnp.broadcast_to(m, vmax_ref.shape).astype(vmax_ref.dtype)
    vidx_ref[...] = jnp.broadcast_to(idx, vidx_ref.shape)


def _argmax_flat_pallas(x):
    # TODO(synk): int32 flat indices; tensors with >= 2**31 elements overflow.
    flat = x.reshape(-1)
    n = flat.shape[0]
    rows = pl.cdiv(n, _LANES)
    padded = rows * _LANES
    if padded != n:
        flat = jnp.pad(flat, (0, padded - n))     # minimal 128-lane pad, masked in kernel
    x2 = flat.reshape(rows, _LANES)

    if jnp.issubdtype(x.dtype, jnp.floating):
        compute_dtype = jnp.float32
    else:
        compute_dtype = jnp.int32                 # compare ints as ints (no f32 collision)
    itemsize = np.dtype(x.dtype).itemsize
    max_rows = max(32, (_VMEM_BLOCK_BUDGET // (_LANES * itemsize)) // 32 * 32)
    if rows <= max_rows:
        tile_rows, nblk = rows, 1
    else:
        tile_rows, nblk = max_rows, pl.cdiv(rows, max_rows)

    # Stage 1: fully "parallel" grid; each block writes its (max, first-index)
    # pair into small lane-dense slabs (both v7x TensorCores stream HBM).
    vmax, vidx = pl.pallas_call(
        functools.partial(_argmax_flat_stage1_kernel, n, tile_rows,
                          compute_dtype),
        out_shape=(jax.ShapeDtypeStruct((nblk * 8, _LANES), compute_dtype),
                   jax.ShapeDtypeStruct((nblk * 8, _LANES), jnp.int32)),
        grid=(nblk,),
        in_specs=[pl.BlockSpec((tile_rows, _LANES), lambda i: (i, 0))],
        out_specs=(pl.BlockSpec((8, _LANES), lambda i: (i, 0)),
                   pl.BlockSpec((8, _LANES), lambda i: (i, 0))),
        compiler_params=_cparams(("parallel",)),
    )(x2)

    # Stage 2: tiny combine with first-occurrence tie-breaking.
    bm = vmax.reshape(nblk, 8, _LANES)[:, 0, 0]
    bi = vidx.reshape(nblk, 8, _LANES)[:, 0, 0]
    gmax = jnp.max(bm)
    res = jnp.min(jnp.where(bm == gmax, bi,
                            jnp.int32(np.iinfo(np.int32).max)))
    # TODO(synk): all-NaN input clamps to n-1 here (torch returns a NaN position).
    return jnp.minimum(res, jnp.int32(n - 1))


def _argmax_pallas(x, dim=None):
    # TODO(synk): torch.argmax returns int64; int32 is used here (JAX default).
    if dim is None:
        return _argmax_flat_pallas(x)
    nd = x.ndim
    dim = dim % nd
    K = x.shape[dim]
    pre = int(np.prod(x.shape[:dim], dtype=np.int64)) if dim > 0 else 1
    post = int(np.prod(x.shape[dim + 1:], dtype=np.int64)) if dim < nd - 1 else 1
    out_shape = x.shape[:dim] + x.shape[dim + 1:]
    if post > 1:
        out = _axis1_pallas(_argmax_axis1_kernel, x.reshape(pre, K, post),
                            jnp.int32, 1)
    else:
        out = _last_axis_pallas(_argmax_last_kernel, x.reshape(pre, K),
                                jnp.int32, 1)
    return out.reshape(out_shape)


# --------------------------- Activation wrapper ----------------------------
class Activation:
    """JAX/Pallas port of the PyTorch `Activation` wrapper (forward only)."""

    def __init__(self, name=None, **params):
        if name is None or name == "identity":
            self._fn = lambda x: x                 # no-op: no HBM round trip
        elif name == "sigmoid":
            self._fn = lambda x: _elementwise_pallas(jax.nn.sigmoid, x)
        elif name == "softmax2d":
            self._fn = lambda x: _softmax_pallas(x, 1, log=False)
        elif name == "softmax":
            dim = params.get("dim", None)
            self._fn = lambda x: _softmax_pallas(x, dim, log=False)
        elif name == "logsoftmax":
            dim = params.get("dim", None)
            self._fn = lambda x: _softmax_pallas(x, dim, log=True)
        elif name == "tanh":
            self._fn = lambda x: _elementwise_pallas(jnp.tanh, x)
        elif name == "argmax":
            dim = params.get("dim", None)
            self._fn = lambda x: _argmax_pallas(x, dim)
        elif name == "argmax2d":
            self._fn = lambda x: _argmax_pallas(x, 1)
        elif name == "clamp":
            lo = params.get("min", 0.0)
            hi = params.get("max", 1.0)
            self._fn = lambda x: _elementwise_pallas(
                lambda v: jnp.clip(v, lo, hi), x)
        elif callable(name):
            # Arbitrary user callable: plain passthrough (no Pallas lowering).
            self._fn = name(**params)
        else:
            raise ValueError(
                "Activation should be callable/sigmoid/softmax/logsoftmax/"
                f"tanh/argmax/argmax2d/clamp/None; got {name}"
            )

    def __call__(self, x):
        return self._fn(x)


# --------------------------------- demo ------------------------------------
if __name__ == "__main__":
    key = jax.random.PRNGKey(0)
    x = jax.random.normal(key, (2, 4, 16, 16), dtype=jnp.float32)  # NCHW

    # tol=None -> exact integer compare; softmax uses approx reciprocal (EUP),
    # so its tolerance is looser than the exact-math paths.
    checks = [
        ("sigmoid", Activation("sigmoid")(x), jax.nn.sigmoid(x), 1e-5),
        ("tanh", Activation("tanh")(x), jnp.tanh(x), 1e-5),
        ("identity", Activation("identity")(x), x, 0.0),
        ("clamp", Activation("clamp", min=0.0, max=1.0)(x),
         jnp.clip(x, 0.0, 1.0), 0.0),
        ("softmax2d", Activation("softmax2d")(x),
         jax.nn.softmax(x, axis=1), 5e-3),
        ("softmax dim=1", Activation("softmax", dim=1)(x),
         jax.nn.softmax(x, axis=1), 5e-3),
        ("softmax dim=-1", Activation("softmax", dim=-1)(x),
         jax.nn.softmax(x, axis=-1), 5e-3),
        ("logsoftmax dim=1", Activation("logsoftmax", dim=1)(x),
         jax.nn.log_softmax(x, axis=1), 1e-5),
        ("argmax2d", Activation("argmax2d")(x),
         jnp.argmax(x, axis=1).astype(jnp.int32), None),
        ("argmax dim=1", Activation("argmax", dim=1)(x),
         jnp.argmax(x, axis=1).astype(jnp.int32), None),
        ("argmax dim=-1", Activation("argmax", dim=-1)(x),
         jnp.argmax(x, axis=-1).astype(jnp.int32), None),
        ("argmax flat", Activation("argmax")(x),
         jnp.argmax(x).astype(jnp.int32), None),
    ]

    for name, got, want, tol in checks:
        got = jax.block_until_ready(got)
        assert got.shape == want.shape, (name, got.shape, want.shape)
        if tol is None:
            np.testing.assert_array_equal(np.asarray(got), np.asarray(want),
                                          err_msg=name)
        else:
            np.testing.assert_allclose(np.asarray(got), np.asarray(want),
                                       rtol=tol, atol=tol, err_msg=name)

    print("KERNEL_OK")
</pallas_src>

<mosaic_0001>
module attributes {stable_mosaic.version = 11 : i64} {
  func.func @_ew_kernel(%arg0: i32, %arg1: memref<16x128xf32, #tpu.memory_space<vmem>>, %arg2: memref<16x128xf32, #tpu.memory_space<vmem>>) attributes {dimension_semantics = [#tpu.dimension_semantics<parallel>], iteration_bounds = array<i64: 1>, scalar_prefetch = 0 : i64, scratch_operands = 0 : i64, tpu.core_type = #tpu.core_type<tc>, window_params = [{transform_indices = @transform_0, window_bounds = array<i64: 16, 128>}, {transform_indices = @transform_1, window_bounds = array<i64: 16, 128>}]} {
    %c0 = arith.constant 0 : index
    %c0_0 = arith.constant 0 : index
    %0 = vector.load %arg1[%c0, %c0_0] : memref<16x128xf32, #tpu.memory_space<vmem>>, vector<16x128xf32>
    %1 = arith.negf %0 : vector<16x128xf32>
    %2 = math.exp %1 : vector<16x128xf32>
    %cst = arith.constant 1.000000e+00 : f32
    %3 = vector.broadcast %cst : f32 to vector<16x128xf32>
    %4 = arith.addf %3, %2 : vector<16x128xf32>
    %5 = arith.divf %3, %4 : vector<16x128xf32>
    %c0_1 = arith.constant 0 : index
    %c0_2 = arith.constant 0 : index
    %6 = vector.load %arg2[%c0_1, %c0_2] : memref<16x128xf32, #tpu.memory_space<vmem>>, vector<16x128xf32>
    tpu.vector_store %arg2[%c0_1, %c0_2], %5 {strides = array<i32>} : memref<16x128xf32, #tpu.memory_space<vmem>>, vector<16x128xf32>,
    return
  }
  func.func @transform_0(%arg0: i32) -> (i32, i32) {
    %c0_i32 = arith.constant 0 : i32
    %c0_i32_0 = arith.constant 0 : i32
    return %arg0, %c0_i32 : i32, i32
  }
  func.func @transform_1(%arg0: i32) -> (i32, i32) {
    %c0_i32 = arith.constant 0 : i32
    %c0_i32_0 = arith.constant 0 : i32
    return %arg0, %c0_i32 : i32, i32
  }
}

</mosaic_0001>

<bundles_post_ra>
// kernel: tpu_custom_call.1
= control target key start
LH: loop header
LB: loop body
LE: loop exit
PB: predicated region body
PF: predicated region fallthrough
CT: control target
= control target key end

     0   :  { %6 = vsyncpa [#allocation3], 0  ;;  %s162_s0 = inlined_call_operand.hbm [shape: f32[16,128], index: 0, kind: input, shape index: {}]   ;;  %s163_s1 = inlined_call_operand.hbm [shape: f32[16,128], index: 1, kind: output, shape index: {}]  }
   0x1   :  { %7 = vsyncpa [#allocation4], 0  ;;  %s118_s6 = smov [#allocation2]   ;;  %s70_s10 = scalar_lea.hbm %s162_s0, 256 }
   0x2   :  { %s13_s7 = sshll.u32 %s118_s6, 4  ;;  %p71_p0 = scmp.ne.s32.totalorder %s162_s0, %s70_s10  ;;  %s14_s7 = int_to_ptr.vmem [resolvable:$true] %s13_s7 }
   0x3   :  { %p74_p1 = scmp.lt.u32.totalorder %s70_s10, %s162_s0 }
   0x5   :  { %p76_p2 = pnand %p74_p1, %p71_p0 }
   0x7   :  { %79 = shalt.err (!%p76_p2)
}
   0x8   :  { %s80_s15 = scalar_lea.vmem %s14_s7, 256  ;;  %p85_p4 = scmp.lt.s32.totalorder %s14_s7, %s14_s7 }
   0x9   :  { %p81_p3 = scmp.ne.s32.totalorder %s14_s7, %s80_s15  ;;  %p86_p5 = scmp.lt.s32.totalorder %s80_s15, %s80_s15 }
   0xb   :  { %p87_p6 = por %p86_p5, %p85_p4 }
   0xd   :  { %p88_p7 = pnand %p87_p6, %p81_p3 }
   0xf   :  { %91 = shalt.err (!%p88_p7)
}
  0x10   :  { %s119_s16 = smov 128   ;;  %s120_s17 = smov 8  }
  0x11   :  { %19 = dma.hbm_to_vmem [thread:$0]  %s162_s0, 256, %s14_s7, [#allocation3], %s119_s16, %s119_s16, %s120_s17  }
  0x12   :  { %114 = dma.done.wait [#allocation3], 256  }
  0x13   :  { %115 = vsyncadd [#allocation3], 4294967040  ;;  %v23_v0 = vld [vmem:[#allocation2] sm:$0xff]  ;;  %v24_v1 = vld [vmem:[#allocation2 + $0x8] sm:$0xff]  ;;  %s121_s20 = smov [#allocation5]  }
  0x14   :  { %v56_v2 = vmul.f32 -1.442695, %v23_v0  ;;  %v57_v3 = vmul.f32 -1.442695, %v24_v1  ;;  %s44_s21 = sshll.u32 %s121_s20, 4  ;;  %s45_s21 = int_to_ptr.vmem [resolvable:$true] %s44_s21 }
  0x15   :  { %s92_s0 = scalar_lea.vmem %s45_s21, 256  ;;  %p97_p9 = scmp.lt.s32.totalorder %s45_s21, %s45_s21 }
  0x16   :  { %62 = vpow2.f32 %v56_v2  ;;  %p93_p8 = scmp.ne.s32.totalorder %s45_s21, %s92_s0  ;;  %p98_p10 = scmp.lt.s32.totalorder %s92_s0, %s92_s0 }
  0x17   :  { %64 = vpow2.f32 %v57_v3 }
  0x18   :  { %p99_p11 = por %p98_p10, %p97_p9 }
  0x1a   :  { %p100_p12 = pnand %p99_p11, %p93_p8 }
  0x20   :  { %v63_v4 = vpop.eup %62 }
  0x21   :  { %v65_v5 = vpop.eup %64  ;;  %v31_v6 = vadd.f32 1.0, %v63_v4 }
  0x22   :  { %v32_v7 = vadd.f32 1.0, %v65_v5 }
  0x23   :  { %66 = vrcp.f32 %v31_v6 }
  0x24   :  { %68 = vrcp.f32 %v32_v7 }
  0x2d   :  { %v67_v8 = vpop.eup %66 }
  0x2e   :  { %v69_v9 = vpop.eup %68  ;;  %37 = vst [vmem:[#allocation5] sm:$0xff] %v67_v8 }
  0x2f   :  { %38 = vst [vmem:[#allocation5 + $0x8] sm:$0xff] %v69_v9 }
  0x30   :  { %103 = shalt.err (!%p100_p12)
}
  0x31   :  { %s104_s24 = scalar_lea.hbm %s163_s1, 256 }
  0x32   :  { %p105_p13 = scmp.ne.s32.totalorder %s163_s1, %s104_s24  ;;  %p108_p0 = scmp.lt.u32.totalorder %s104_s24, %s163_s1 }
  0x34   :  { %p110_p1 = pnand %p108_p0, %p105_p13 }
  0x36   :  { %113 = shalt.err (!%p110_p1)
}
  0x37   :  { %50 = dma.vmem_to_hbm [thread:$0]  %s45_s21, 256, %s163_s1, [#allocation4], %s119_s16, %s119_s16, %s120_s17  }
  0x38   :  { %116 = dma.done.wait [#allocation4], 256  }
  0x39   :  { %117 = vsyncadd [#allocation4], 4294967040 }
  0x3a   :  { %54 = vsyncpa [#allocation3], 1 }
  0x3b   :  { %55 = vsyncpa [#allocation4], 1 }

</bundles_post_ra>
